<compile_context>
chip_gen: v5e
topology: v5e:2x2
jax: 0.10.0
libtpu: 0.0.40
codegen_flags: <defaults>
</compile_context>

<pallas_src>
import math
from functools import partial

import jax
import jax.numpy as jnp
from jax import lax
from jax.experimental import pallas as pl
from jax.experimental.pallas import tpu as pltpu


# ----------------------------------------------------------------------------
# Kernel 1: fused Q/K/V projection, tiled over rows of x (B*S).
#   x block:  (Tr, H)   bf16 (pipelined)
#   w block:  (H, 3H)   bf16 (resident: constant index_map)
#   b block:  (1, 3H)   f32  (resident)
#   outputs:  three (Tr, H) bf16 blocks (lane-dense stores)
# ----------------------------------------------------------------------------
def qkv_proj_kernel(x_ref, w_ref, b_ref, q_ref, k_ref, v_ref, *, hidden):
    y = jnp.dot(x_ref[...], w_ref[...],
                preferred_element_type=jnp.float32) + b_ref[...]
    y = y.astype(q_ref.dtype)
    # Static lane slices at multiples of H (multiples of 128 at real BERT sizes).
    q_ref[...] = y[:, :hidden]
    k_ref[...] = y[:, hidden:2 * hidden]
    v_ref[...] = y[:, 2 * hidden:]


# ----------------------------------------------------------------------------
# Kernel 2: attention over one q-row tile of one batch element, all heads.
#   q block:    (1, Tq, H) bf16  (already scaled by 1/sqrt(D) via folded weights)
#   k/v blocks: (1, S,  H) bf16  (resident across q-tiles of the same batch)
#   mask block: (1, 1,  S) f32   additive mask
#   out block:  (1, Tq, H) f32   single lane-dense (width H) store
# ----------------------------------------------------------------------------
def attn_kernel(q_ref, k_ref, v_ref, mask_ref, out_ref, *, num_heads, head_dim):
    mask = mask_ref[0]                    # (1, S) -> broadcasts over query rows

    ctx_parts = []
    for h in range(num_heads):            # static, unrolled loop over heads
        lo = h * head_dim
        hi = lo + head_dim
        q_h = q_ref[0, :, lo:hi]          # (Tq, D) bf16
        k_h = k_ref[0, :, lo:hi]          # (S,  D) bf16
        v_h = v_ref[0, :, lo:hi]          # (S,  D) bf16

        # q @ k^T without materializing a transpose: contract last dims.
        scores = lax.dot_general(
            q_h, k_h, (((1,), (1,)), ((), ())),
            preferred_element_type=jnp.float32)            # (Tq, S) f32
        scores = scores + mask

        # numerically stable softmax over the key axis
        m = jnp.max(scores, axis=-1, keepdims=True)
        p = jnp.exp(scores - m)
        denom = jnp.sum(p, axis=-1, keepdims=True)
        probs = (p * pl.reciprocal(denom, approx=True)).astype(v_h.dtype)

        ctx_parts.append(
            jnp.dot(probs, v_h, preferred_element_type=jnp.float32))  # (Tq, D)

    # Single lane-dense store of the full (Tq, H) context tile.
    out_ref[0] = jnp.concatenate(ctx_parts, axis=-1).astype(out_ref.dtype)


# ----------------------------------------------------------------------------
# Parameter preparation (do ONCE, outside the per-token hot path):
#  - transpose PyTorch (out, in) weights to (in, out)
#  - fold 1/sqrt(head_dim) into the Q projection
#  - concatenate into a single (H, 3H) bf16 weight and (1, 3H) f32 bias
# ----------------------------------------------------------------------------
def prepare_params(params, num_heads):
    H = params["wq"].shape[0]
    D = H // num_heads
    scale = 1.0 / math.sqrt(D)
    w_qkv = jnp.concatenate(
        [params["wq"].T * scale, params["wk"].T, params["wv"].T], axis=1)
    b_qkv = jnp.concatenate(
        [params["bq"] * scale, params["bk"], params["bv"]])[None, :]
    return {
        "w_qkv": w_qkv.astype(jnp.bfloat16),   # (H, 3H)
        "b_qkv": b_qkv.astype(jnp.float32),    # (1, 3H)
    }


# ----------------------------------------------------------------------------
# Forward pass wrapper
# ----------------------------------------------------------------------------
def bert_self_attention(hidden_states, attention_mask, prepared, num_heads,
                        row_tile=512, q_tile=256):
    """hidden_states: [B, S, H] f32; attention_mask: [B, 1, 1, S] additive f32."""
    B, S, H = hidden_states.shape
    D = H // num_heads
    rows = B * S

    row_tile = min(row_tile, rows)
    q_tile = min(q_tile, S)

    x2d = hidden_states.reshape(rows, H).astype(jnp.bfloat16)

    # ---- fused, tiled QKV projection -------------------------------------
    q2d, k2d, v2d = pl.pallas_call(
        partial(qkv_proj_kernel, hidden=H),
        out_shape=[jax.ShapeDtypeStruct((rows, H), jnp.bfloat16)] * 3,
        grid=(pl.cdiv(rows, row_tile),),
        in_specs=[
            pl.BlockSpec((row_tile, H), lambda i: (i, 0)),     # x tile (pipelined)
            pl.BlockSpec((H, 3 * H), lambda i: (0, 0)),        # weight (resident)
            pl.BlockSpec((1, 3 * H), lambda i: (0, 0)),        # bias   (resident)
        ],
        out_specs=[pl.BlockSpec((row_tile, H), lambda i: (i, 0))] * 3,
        compiler_params=pltpu.CompilerParams(
            dimension_semantics=("parallel",),
            vmem_limit_bytes=48 * 1024 * 1024),
    )(x2d, prepared["w_qkv"], prepared["b_qkv"])

    # free reshapes only — NO head transposes
    q = q2d.reshape(B, S, H)
    k = k2d.reshape(B, S, H)
    v = v2d.reshape(B, S, H)
    mask = attention_mask.reshape(B, 1, S).astype(jnp.float32)

    # ---- attention: grid over (batch, q-row tile), all heads in-kernel ----
    # Inner grid axis = q tile, so K / V / mask (constant over that axis)
    # stay resident in VMEM across all q tiles of a batch element.
    context = pl.pallas_call(
        partial(attn_kernel, num_heads=num_heads, head_dim=D),
        out_shape=jax.ShapeDtypeStruct((B, S, H), jnp.float32),
        grid=(B, pl.cdiv(S, q_tile)),
        in_specs=[
            pl.BlockSpec((1, q_tile, H), lambda b, i: (b, i, 0)),  # q tile
            pl.BlockSpec((1, S, H), lambda b, i: (b, 0, 0)),       # full K (resident per b)
            pl.BlockSpec((1, S, H), lambda b, i: (b, 0, 0)),       # full V (resident per b)
            pl.BlockSpec((1, 1, S), lambda b, i: (b, 0, 0)),       # additive mask
        ],
        out_specs=pl.BlockSpec((1, q_tile, H), lambda b, i: (b, i, 0)),
        compiler_params=pltpu.CompilerParams(
            dimension_semantics=("parallel", "parallel"),
            vmem_limit_bytes=48 * 1024 * 1024),
    )(q, k, v, mask)

    return context  # [B, S, H]


# ----------------------------------------------------------------------------
# Pure-JAX f32 reference for verification
# ----------------------------------------------------------------------------
def reference(hidden_states, attention_mask, params, num_heads):
    B, S, H = hidden_states.shape
    D = H // num_heads
    q = hidden_states @ params["wq"].T + params["bq"]
    k = hidden_states @ params["wk"].T + params["bk"]
    v = hidden_states @ params["wv"].T + params["bv"]

    def split(t):
        return t.reshape(B, S, num_heads, D).transpose(0, 2, 1, 3)

    q, k, v = split(q), split(k), split(v)
    scores = jnp.einsum("bhqd,bhkd->bhqk", q, k) / math.sqrt(D)
    scores = scores + attention_mask
    probs = jax.nn.softmax(scores, axis=-1)
    ctx = jnp.einsum("bhqk,bhkd->bhqd", probs, v)
    return ctx.transpose(0, 2, 1, 3).reshape(B, S, H)


if __name__ == "__main__":
    # Small synthetic config: batch=2, seq=8, hidden=32, heads=4 (head_size=8)
    B, S, H, NH = 2, 8, 32, 4

    key = jax.random.PRNGKey(0)
    k_x, k_wq, k_wk, k_wv, k_bq, k_bk, k_bv, k_mask = jax.random.split(key, 8)

    hidden_states = jax.random.normal(k_x, (B, S, H), dtype=jnp.float32)

    params = {
        "wq": jax.random.normal(k_wq, (H, H), dtype=jnp.float32) * 0.05,
        "wk": jax.random.normal(k_wk, (H, H), dtype=jnp.float32) * 0.05,
        "wv": jax.random.normal(k_wv, (H, H), dtype=jnp.float32) * 0.05,
        "bq": jax.random.normal(k_bq, (H,), dtype=jnp.float32) * 0.01,
        "bk": jax.random.normal(k_bk, (H,), dtype=jnp.float32) * 0.01,
        "bv": jax.random.normal(k_bv, (H,), dtype=jnp.float32) * 0.01,
    }

    # Additive attention mask [B, 1, 1, S]: 0 for attend, -10000 for masked.
    mask_bool = jax.random.bernoulli(k_mask, p=0.9, shape=(B, 1, 1, S))
    attention_mask = jnp.where(mask_bool, 0.0, -10000.0).astype(jnp.float32)

    prepared = prepare_params(params, NH)

    out = bert_self_attention(hidden_states, attention_mask, prepared, NH)
    out = jax.block_until_ready(out)

    ref = reference(hidden_states, attention_mask, params, NH)
    assert out.shape == (B, S, H)
    # bf16 matmuls + approx reciprocal => loosen tolerance vs the f32 reference.
    assert jnp.allclose(out, ref, atol=5e-2, rtol=5e-2), "mismatch vs reference"

    print("KERNEL_OK")
</pallas_src>

<mosaic_0001>
module attributes {stable_mosaic.version = 11 : i64} {
  func.func @qkv_proj_kernel(%arg0: i32, %arg1: memref<16x32xbf16, #tpu.memory_space<vmem>>, %arg2: memref<32x96xbf16, #tpu.memory_space<vmem>>, %arg3: memref<1x96xf32, #tpu.memory_space<vmem>>, %arg4: memref<16x32xbf16, #tpu.memory_space<vmem>>, %arg5: memref<16x32xbf16, #tpu.memory_space<vmem>>, %arg6: memref<16x32xbf16, #tpu.memory_space<vmem>>) attributes {dimension_semantics = [#tpu.dimension_semantics<parallel>], iteration_bounds = array<i64: 1>, scalar_prefetch = 0 : i64, scratch_operands = 0 : i64, tpu.core_type = #tpu.core_type<tc>, window_params = [{transform_indices = @transform_0, window_bounds = array<i64: 16, 32>}, {pipeline_mode = #tpu.pipeline_mode<synchronous>, transform_indices = @transform_1, window_bounds = array<i64: 32, 96>}, {pipeline_mode = #tpu.pipeline_mode<synchronous>, transform_indices = @transform_2, window_bounds = array<i64: 1, 96>}, {transform_indices = @transform_3, window_bounds = array<i64: 16, 32>}, {transform_indices = @transform_4, window_bounds = array<i64: 16, 32>}, {transform_indices = @transform_5, window_bounds = array<i64: 16, 32>}]} {
    %c0 = arith.constant 0 : index
    %c0_0 = arith.constant 0 : index
    %0 = vector.load %arg1[%c0, %c0_0] : memref<16x32xbf16, #tpu.memory_space<vmem>>, vector<16x32xbf16>
    %c0_1 = arith.constant 0 : index
    %c0_2 = arith.constant 0 : index
    %1 = vector.load %arg2[%c0_1, %c0_2] : memref<32x96xbf16, #tpu.memory_space<vmem>>, vector<32x96xbf16>
    %cst = arith.constant dense<0.000000e+00> : vector<16x96xf32>
    %2 = tpu.matmul %0, %1, %cst {dimension_numbers = #tpu.dot_dimension_numbers<[1], [0], [0], [1], [0, 0, 1, 1], [], []>} : vector<16x32xbf16>, vector<32x96xbf16>, vector<16x96xf32> -> vector<16x96xf32>
    %c0_3 = arith.constant 0 : index
    %c0_4 = arith.constant 0 : index
    %3 = vector.load %arg3[%c0_3, %c0_4] : memref<1x96xf32, #tpu.memory_space<vmem>>, vector<1x96xf32>
    %4 = vector.broadcast %3 : vector<1x96xf32> to vector<16x96xf32>
    %5 = arith.addf %2, %4 : vector<16x96xf32>
    %6 = arith.truncf %5 : vector<16x96xf32> to vector<16x96xbf16>
    %7 = vector.extract_strided_slice %6 {offsets = [0, 0], sizes = [16, 32], strides = [1, 1]} : vector<16x96xbf16> to vector<16x32xbf16>
    %c0_5 = arith.constant 0 : index
    %c0_6 = arith.constant 0 : index
    %8 = vector.load %arg4[%c0_5, %c0_6] : memref<16x32xbf16, #tpu.memory_space<vmem>>, vector<16x32xbf16>
    tpu.vector_store %arg4[%c0_5, %c0_6], %7 {strides = array<i32>} : memref<16x32xbf16, #tpu.memory_space<vmem>>, vector<16x32xbf16>,
    %9 = vector.extract_strided_slice %6 {offsets = [0, 32], sizes = [16, 32], strides = [1, 1]} : vector<16x96xbf16> to vector<16x32xbf16>
    %c0_7 = arith.constant 0 : index
    %c0_8 = arith.constant 0 : index
    %10 = vector.load %arg5[%c0_7, %c0_8] : memref<16x32xbf16, #tpu.memory_space<vmem>>, vector<16x32xbf16>
    tpu.vector_store %arg5[%c0_7, %c0_8], %9 {strides = array<i32>} : memref<16x32xbf16, #tpu.memory_space<vmem>>, vector<16x32xbf16>,
    %11 = vector.extract_strided_slice %6 {offsets = [0, 64], sizes = [16, 32], strides = [1, 1]} : vector<16x96xbf16> to vector<16x32xbf16>
    %c0_9 = arith.constant 0 : index
    %c0_10 = arith.constant 0 : index
    %12 = vector.load %arg6[%c0_9, %c0_10] : memref<16x32xbf16, #tpu.memory_space<vmem>>, vector<16x32xbf16>
    tpu.vector_store %arg6[%c0_9, %c0_10], %11 {strides = array<i32>} : memref<16x32xbf16, #tpu.memory_space<vmem>>, vector<16x32xbf16>,
    return
  }
  func.func @transform_0(%arg0: i32) -> (i32, i32) {
    %c0_i32 = arith.constant 0 : i32
    %c0_i32_0 = arith.constant 0 : i32
    return %arg0, %c0_i32 : i32, i32
  }
  func.func @transform_1(%arg0: i32) -> (i32, i32) {
    %c0_i32 = arith.constant 0 : i32
    %c0_i32_0 = arith.constant 0 : i32
    %c0_i32_1 = arith.constant 0 : i32
    return %c0_i32, %c0_i32_0 : i32, i32
  }
  func.func @transform_2(%arg0: i32) -> (i32, i32) {
    %c0_i32 = arith.constant 0 : i32
    %c0_i32_0 = arith.constant 0 : i32
    %c0_i32_1 = arith.constant 0 : i32
    return %c0_i32, %c0_i32_0 : i32, i32
  }
  func.func @transform_3(%arg0: i32) -> (i32, i32) {
    %c0_i32 = arith.constant 0 : i32
    %c0_i32_0 = arith.constant 0 : i32
    return %arg0, %c0_i32 : i32, i32
  }
  func.func @transform_4(%arg0: i32) -> (i32, i32) {
    %c0_i32 = arith.constant 0 : i32
    %c0_i32_0 = arith.constant 0 : i32
    return %arg0, %c0_i32 : i32, i32
  }
  func.func @transform_5(%arg0: i32) -> (i32, i32) {
    %c0_i32 = arith.constant 0 : i32
    %c0_i32_0 = arith.constant 0 : i32
    return %arg0, %c0_i32 : i32, i32
  }
}

</mosaic_0001>

<bundles_post_ra>
// kernel: tpu_custom_call.1
= control target key start
LH: loop header
LB: loop body
LE: loop exit
PB: predicated region body
PF: predicated region fallthrough
CT: control target
= control target key end

     0   :  { %11 = vsyncpa [#allocation3], 0  ;;  %s407_s0 = inlined_call_operand.hbm [shape: bf16[16,32], index: 0, kind: input, shape index: {}]   ;;  %s408_s1 = inlined_call_operand.hbm [shape: bf16[32,96], index: 1, kind: input, shape index: {}]   ;;  %s409_s2 = inlined_call_operand.vmem [shape: f32[1,96], index: 2, kind: input, shape index: {}]   ;;  %s410_s3 = inlined_call_operand.hbm [shape: bf16[16,32], index: 3, kind: output, shape index: {0}]   ;;  %s411_s4 = inlined_call_operand.hbm [shape: bf16[16,32], index: 4, kind: output, shape index: {1}]   ;;  %s412_s5 = inlined_call_operand.hbm [shape: bf16[16,32], index: 5, kind: output, shape index: {2}]  }
   0x1   :  { %12 = vsyncpa [#allocation6], 0 }
   0x2   :  { %13 = vsyncpa [#allocation4], 0 }
   0x3   :  { %14 = vsyncpa [#allocation9], 0  ;;  %s19_s20 = sshll.u32 %s407_s0, 4  ;;  %s328_s21 = smov [#allocation2]   ;;  %s20_s20 = int_to_ptr.hbm [resolvable:$true] %s19_s20 }
   0x4   :  { %s21_s22 = sshll.u32 %s328_s21, 4  ;;  %s32_s25 = sshll.u32 %s408_s1, 4  ;;  %s22_s22 = int_to_ptr.vmem [resolvable:$true] %s21_s22  ;;  %s33_s25 = int_to_ptr.hbm [resolvable:$true] %s32_s25 }
   0x5   :  { %s329_s26 = smov 64   ;;  %s330_s27 = smov 4  }
   0x6   :  { %27 = dma.hbm_to_vmem [thread:$0]  %s20_s20, 128, %s22_s22, [#allocation3], %s329_s26, %s329_s26, %s330_s27  }
   0x7   :  { %s331_s28 = smov [#allocation5]  }
   0x8   :  { %s34_s29 = sshll.u32 %s331_s28, 4  ;;  %s35_s29 = int_to_ptr.vmem [resolvable:$true] %s34_s29 }
   0x9   :  { %40 = dma.hbm_to_vmem [thread:$0]  %s33_s25, 256, %s35_s29, [#allocation6], %s329_s26, %s329_s26, %s330_s27  }
   0xa   :  { %320 = dma.done.wait [#allocation3], 128  }
   0xb   :  { %321 = vsyncadd [#allocation3], 4294967168 }
   0xc   :  { %322 = dma.done.wait [#allocation6], 256  }
   0xd   :  { %323 = vsyncadd [#allocation6], 4294967040  ;;  %v190_v0 = vld [vmem:[#allocation5 + $0x8] sm:$0xff]  ;;  %v189_v1 = vld [vmem:[#allocation5] sm:$0xff]  ;;  %vm79_vm0 = vcmask 261120   ;;  %vm99_vm1 = vcmask 257024  }
   0xe   :  { %89 = vmatpush.bf16.msra.mxu0 %v190_v0  ;;  %v188_v2 = vld [vmem:[#allocation2] sm:$0xff]  ;;  %s332_s30 = smov 96   ;;  %s333_s6 = smov [#allocation7]  }
   0xf   :  { %v199_v3 = vld [vmem:[%s409_s2] ss:$0 sm:$0xff]  ;;  %s124_s7 = sshll.u32 %s333_s6, 4  ;;  %s126_s10 = sshll.u32 %s410_s3, 4  ;;  %s125_s7 = int_to_ptr.vmem [resolvable:$true] %s124_s7  ;;  %s127_s10 = int_to_ptr.hbm [resolvable:$true] %s126_s10 }
  0x10   :  { %s334_s2 = smov [#allocation8]   ;;  %s139_s13 = sshll.u32 %s411_s4, 4  ;;  %s140_s13 = int_to_ptr.hbm [resolvable:$true] %s139_s13 }
  0x11   :  { %s137_s3 = sshll.u32 %s334_s2, 4  ;;  %s335_s14 = smov [#allocation10]   ;;  %s138_s3 = int_to_ptr.vmem [resolvable:$true] %s137_s3 }
  0x12   :  { %90 = vmatpush.bf16.msra.mxu0 %v189_v1  ;;  %s150_s15 = sshll.u32 %s335_s14, 4  ;;  %s152_s18 = sshll.u32 %s412_s5, 4  ;;  %s151_s15 = int_to_ptr.vmem [resolvable:$true] %s150_s15  ;;  %s153_s18 = int_to_ptr.hbm [resolvable:$true] %s152_s18 }
  0x15   :  { %187 = vmatmul.msk.bf16.vlgmr.msra.gmra.mxu0 %vm79_vm0, %v188_v2 }
  0x92   :  { %v92_v4 = vpop.f32.mrf.mxu0 }
  0x93   :  { %v93_v5 = vadd.f32 %v199_v3, %v92_v4 }
  0x95   :  { %v97_v6 = vpack.c.bf16 %v93_v5, %v93_v5 }
  0x97   :  { %100 = vst.msk [vmem:[#allocation7] sm:$0xf] %vm99_vm1, %v97_v6  ;;  %112 = vrot.lane.b32.xlu1 %v97_v6, %s329_s26  ;;  %104 = vrot.lane.b32.xlu0 %v97_v6, %s332_s30 }
  0x9a   :  { %v94_v7 = vpop.f32.mrf.mxu0 }
  0x9b   :  { %v95_v8 = vadd.f32 %v199_v3, %v94_v7 }
  0x9d   :  { %v98_v9 = vpack.c.bf16 %v95_v8, %v95_v8 }
  0x9f   :  { %101 = vst.msk [vmem:[#allocation7 + $0x4] sm:$0xf] %vm99_vm1, %v98_v9  ;;  %114 = vrot.lane.b32.xlu1 %v98_v9, %s329_s26  ;;  %106 = vrot.lane.b32.xlu0 %v98_v9, %s332_s30 }
  0xa0   :  { %132 = dma.vmem_to_hbm [thread:$0]  %s125_s7, 128, %s127_s10, [#allocation4], %s329_s26, %s329_s26, %s330_s27  }
 0x109   :  { %v113_v10 = vpop.permute.xlu1 %112  ;;  %v105_v11 = vpop.permute.xlu0 %104 }
 0x10a   :  { %118 = vst.msk [vmem:[#allocation10] sm:$0xf] %vm99_vm1, %v113_v10 }
 0x10b   :  { %110 = vst.msk [vmem:[#allocation8] sm:$0xf] %vm99_vm1, %v105_v11 }
 0x111   :  { %v115_v12 = vpop.permute.xlu1 %114  ;;  %v107_v13 = vpop.permute.xlu0 %106 }
 0x112   :  { %119 = vst.msk [vmem:[#allocation10 + $0x4] sm:$0xf] %vm99_vm1, %v115_v12 }
 0x113   :  { %111 = vst.msk [vmem:[#allocation8 + $0x4] sm:$0xf] %vm99_vm1, %v107_v13 }
 0x114   :  { %145 = dma.vmem_to_hbm [thread:$0]  %s138_s3, 128, %s140_s13, [#allocation9], %s329_s26, %s329_s26, %s330_s27  }
 0x115   :  { %158 = dma.vmem_to_hbm [thread:$0]  %s151_s15, 128, %s153_s18, [#allocation9], %s329_s26, %s329_s26, %s330_s27  }
 0x116   :  { %324 = dma.done.wait [#allocation4], 128  }
 0x117   :  { %325 = vsyncadd [#allocation4], 4294967168 }
 0x118   :  { %326 = dma.done.wait [#allocation9], 256  }
 0x119   :  { %327 = vsyncadd [#allocation9], 4294967040 }
 0x11a   :  { %171 = vsyncpa [#allocation3], 1 }
 0x11b   :  { %172 = vsyncpa [#allocation6], 1 }
 0x11c   :  { %173 = vsyncpa [#allocation4], 1 }
 0x11d   :  { %174 = vsyncpa [#allocation9], 1 }

</bundles_post_ra>
